<compile_context>
chip_gen: v5e
topology: v5e:2x2
jax: 0.10.0
libtpu: 0.0.40
codegen_flags: <defaults>
</compile_context>

<pallas_src>
import functools

import jax
import jax.numpy as jnp
from jax.experimental import pallas as pl
from jax.experimental.pallas import tpu as pltpu

IN_F = 28 * 28   # 784
H1 = 256
H2 = 64
OUT = 10
H2_PAD = 128     # lane-dense hidden-2 width (zero-padded columns)
OUT_PAD = 128    # lane-dense output width  (zero-padded columns)


def _round_up(n, m):
    return ((n + m - 1) // m) * m


def _cdiv(a, b):
    return -(-a // b)


def mlp_kernel(x_ref, w1_ref, b1_ref, w2_ref, b2_ref, w3_ref, b3_ref, o_ref):
    x = x_ref[...]
    if x.dtype != jnp.bfloat16:          # no-op when the dataset is stored in bf16 upstream
        x = x.astype(jnp.bfloat16)
    # fc1: bf16 MXU operands, f32 accumulate; bias+ReLU+bf16 cast fused so the
    # intermediate held across the next dot is bf16 (half the vreg/spill bytes).
    h1 = jnp.maximum(
        jnp.dot(x, w1_ref[...], preferred_element_type=jnp.float32) + b1_ref[...],
        0.0).astype(jnp.bfloat16)
    # fc2 (output padded to 128 lanes; padded cols have zero weight/bias -> stay 0).
    h2 = jnp.maximum(
        jnp.dot(h1, w2_ref[...], preferred_element_type=jnp.float32) + b2_ref[...],
        0.0).astype(jnp.bfloat16)
    # fc3 -> lane-dense (TM, 128) bf16 store (unmasked vst, half the writeback bytes).
    h3 = jnp.dot(h2, w3_ref[...], preferred_element_type=jnp.float32) + b3_ref[...]
    o_ref[...] = h3.astype(o_ref.dtype)


def prepare_params(w1, b1, w2, b2, w3, b3):
    """One-time conversion from torch Linear layout (out,in)/(out,) to kernel layout.

    Weights -> (in, out) bf16 with narrow dims zero-padded to 128; biases -> (1, out) f32.
    Zero-padded columns/rows contribute exactly 0, so the math is unchanged.
    """
    w1_t = w1.T.astype(jnp.bfloat16)                                                # (784, 256)
    w2_t = jnp.zeros((H1, H2_PAD), jnp.bfloat16).at[:, :H2].set(w2.T.astype(jnp.bfloat16))
    w3_t = jnp.zeros((H2_PAD, OUT_PAD), jnp.bfloat16).at[:H2, :OUT].set(w3.T.astype(jnp.bfloat16))
    b1_r = b1.astype(jnp.float32)[None, :]                                          # (1, 256)
    b2_r = jnp.zeros((1, H2_PAD), jnp.float32).at[0, :H2].set(b2.astype(jnp.float32))
    b3_r = jnp.zeros((1, OUT_PAD), jnp.float32).at[0, :OUT].set(b3.astype(jnp.float32))
    return w1_t, b1_r, w2_t, b2_r, w3_t, b3_r


@functools.partial(jax.jit, static_argnames=("tm",))
def mlp_forward(x, params, tm=1024):
    """x: (B, 784) bf16 (preferred; f32 also accepted). Returns (B, 10) f32 logits.

    tm: max batch-tile rows. Large tiles (512-1024) amortize the ~0.35 us/step
    overhead and hit ~85% of HBM roofline; keep them on v5e too (mem-bound there
    as well).  Actual TM is shrunk so batch padding stays <= 15 rows per tile and
    the grid has an even number of >= 2 steps (v7x megacore) whenever B >= 16.
    """
    w1_t, b1_r, w2_t, b2_r, w3_t, b3_r = params
    B = x.shape[0]

    # ---- batch tiling ------------------------------------------------------
    n_steps = max(1, _cdiv(B, tm))
    if n_steps == 1 and B >= 16:
        n_steps = 2                       # v7x: >=2 grid steps so both TCs get work
    if n_steps > 1 and n_steps % 2 == 1:
        n_steps += 1                      # even step count shards evenly across 2 TCs
    TM = _round_up(_cdiv(B, n_steps), 16)  # 16-row align (bf16 sublane packing), <=15 pad rows/tile
    B_pad = TM * n_steps
    if B_pad != B:
        x = jnp.pad(x, ((0, B_pad - B), (0, 0)))
    grid = (n_steps,)

    resident = lambda shape: pl.BlockSpec(shape, lambda i: (0, 0))  # stays in VMEM across grid

    # ---- VMEM budget from actual footprint ----------------------------------
    bf16, f32 = 2, 4
    x_b = x.dtype.itemsize
    w_bytes = bf16 * (IN_F * H1 + H1 * H2_PAD + H2_PAD * OUT_PAD) + f32 * (H1 + H2_PAD + OUT_PAD)
    stream_bytes = 2 * TM * (x_b * IN_F + bf16 * OUT_PAD)   # double-buffered x + out tiles
    inter_bytes = f32 * TM * (H1 + H2_PAD)                  # worst-case live f32 accumulators
    vmem_limit = int(min(48 << 20, 2 * w_bytes + stream_bytes + inter_bytes + (8 << 20)))

    flops = 2 * B_pad * (IN_F * H1 + H1 * H2_PAD + H2_PAD * OUT_PAD)
    bytes_accessed = B_pad * IN_F * x_b + w_bytes + B_pad * OUT_PAD * bf16

    out = pl.pallas_call(
        mlp_kernel,
        out_shape=jax.ShapeDtypeStruct((B_pad, OUT_PAD), jnp.bfloat16),
        grid=grid,
        in_specs=[
            pl.BlockSpec((TM, IN_F), lambda i: (i, 0)),
            resident(w1_t.shape), resident(b1_r.shape),
            resident(w2_t.shape), resident(b2_r.shape),
            resident(w3_t.shape), resident(b3_r.shape),
        ],
        out_specs=pl.BlockSpec((TM, OUT_PAD), lambda i: (i, 0)),
        compiler_params=pltpu.CompilerParams(
            dimension_semantics=("parallel",),
            vmem_limit_bytes=vmem_limit,
        ),
        cost_estimate=pl.CostEstimate(
            flops=flops, transcendentals=0, bytes_accessed=bytes_accessed),
    )(x, w1_t, b1_r, w2_t, b2_r, w3_t, b3_r)

    # Tiny (B,10) slice + f32 cast; with a real downstream consumer (softmax/loss)
    # prefer consuming the padded (B_pad, 128) bf16 array directly instead.
    return out[:B, :OUT].astype(jnp.float32)


def init_params(key):
    """Deterministic synthetic params with torch.nn.Linear shapes: (out, in) and (out,)."""
    ks = jax.random.split(key, 6)

    def lin(kw, kb, fan_in, fan_out):
        bound = 1.0 / jnp.sqrt(fan_in)
        w = jax.random.uniform(kw, (fan_out, fan_in), jnp.float32, -bound, bound)
        b = jax.random.uniform(kb, (fan_out,), jnp.float32, -bound, bound)
        return w, b

    w1, b1 = lin(ks[0], ks[1], IN_F, H1)
    w2, b2 = lin(ks[2], ks[3], H1, H2)
    w3, b3 = lin(ks[4], ks[5], H2, OUT)
    return w1, b1, w2, b2, w3, b3


if __name__ == "__main__":
    key = jax.random.PRNGKey(0)
    kx, kp = jax.random.split(key)
    B = 8
    x_f32 = jax.random.normal(kx, (B, IN_F), jnp.float32)
    w1, b1, w2, b2, w3, b3 = init_params(kp)

    # One-time preparation (NOT on the forward path):
    #  - params: transpose / pad / bf16 cast
    #  - inputs: dataset stored in bf16 (halves the dominant HBM input stream)
    params = prepare_params(w1, b1, w2, b2, w3, b3)
    x = x_f32.astype(jnp.bfloat16)

    out = mlp_forward(x, params)
    out = jax.block_until_ready(out)

    # Pure-JAX f32 reference (same math as the torch forward). Kernel uses bf16
    # inputs/MXU operands with f32 accumulation and a bf16 logits store, so the
    # tolerance is relaxed to ~5e-2.
    ref = jnp.maximum(x_f32 @ w1.T + b1, 0.0)
    ref = jnp.maximum(ref @ w2.T + b2, 0.0)
    ref = ref @ w3.T + b3
    assert out.shape == (B, OUT)
    max_err = float(jnp.max(jnp.abs(out - ref)))
    assert jnp.allclose(out, ref, atol=5e-2, rtol=5e-2), f"max abs err = {max_err}"

    print("KERNEL_OK")
</pallas_src>

<mosaic_0001>
module attributes {stable_mosaic.version = 11 : i64} {
  func.func @mlp_kernel(%arg0: i32, %arg1: memref<16x784xbf16, #tpu.memory_space<vmem>>, %arg2: memref<784x256xbf16, #tpu.memory_space<vmem>>, %arg3: memref<1x256xf32, #tpu.memory_space<vmem>>, %arg4: memref<256x128xbf16, #tpu.memory_space<vmem>>, %arg5: memref<1x128xf32, #tpu.memory_space<vmem>>, %arg6: memref<128x128xbf16, #tpu.memory_space<vmem>>, %arg7: memref<1x128xf32, #tpu.memory_space<vmem>>, %arg8: memref<16x128xbf16, #tpu.memory_space<vmem>>) attributes {dimension_semantics = [#tpu.dimension_semantics<parallel>], iteration_bounds = array<i64: 1>, scalar_prefetch = 0 : i64, scratch_operands = 0 : i64, tpu.core_type = #tpu.core_type<tc>, window_params = [{transform_indices = @transform_0, window_bounds = array<i64: 16, 784>}, {pipeline_mode = #tpu.pipeline_mode<synchronous>, transform_indices = @transform_1, window_bounds = array<i64: 784, 256>}, {pipeline_mode = #tpu.pipeline_mode<synchronous>, transform_indices = @transform_2, window_bounds = array<i64: 1, 256>}, {pipeline_mode = #tpu.pipeline_mode<synchronous>, transform_indices = @transform_3, window_bounds = array<i64: 256, 128>}, {pipeline_mode = #tpu.pipeline_mode<synchronous>, transform_indices = @transform_4, window_bounds = array<i64: 1, 128>}, {pipeline_mode = #tpu.pipeline_mode<synchronous>, transform_indices = @transform_5, window_bounds = array<i64: 128, 128>}, {pipeline_mode = #tpu.pipeline_mode<synchronous>, transform_indices = @transform_6, window_bounds = array<i64: 1, 128>}, {transform_indices = @transform_7, window_bounds = array<i64: 16, 128>}]} {
    %c0 = arith.constant 0 : index
    %c0_0 = arith.constant 0 : index
    %0 = vector.load %arg1[%c0, %c0_0] : memref<16x784xbf16, #tpu.memory_space<vmem>>, vector<16x784xbf16>
    %c0_1 = arith.constant 0 : index
    %c0_2 = arith.constant 0 : index
    %1 = vector.load %arg2[%c0_1, %c0_2] : memref<784x256xbf16, #tpu.memory_space<vmem>>, vector<784x256xbf16>
    %cst = arith.constant dense<0.000000e+00> : vector<16x256xf32>
    %2 = tpu.matmul %0, %1, %cst {dimension_numbers = #tpu.dot_dimension_numbers<[1], [0], [0], [1], [0, 0, 1, 1], [], []>} : vector<16x784xbf16>, vector<784x256xbf16>, vector<16x256xf32> -> vector<16x256xf32>
    %c0_3 = arith.constant 0 : index
    %c0_4 = arith.constant 0 : index
    %3 = vector.load %arg3[%c0_3, %c0_4] : memref<1x256xf32, #tpu.memory_space<vmem>>, vector<1x256xf32>
    %4 = vector.broadcast %3 : vector<1x256xf32> to vector<16x256xf32>
    %5 = arith.addf %2, %4 : vector<16x256xf32>
    %cst_5 = arith.constant 0.000000e+00 : f32
    %6 = vector.broadcast %cst_5 : f32 to vector<16x256xf32>
    %7 = arith.maximumf %5, %6 : vector<16x256xf32>
    %8 = arith.truncf %7 : vector<16x256xf32> to vector<16x256xbf16>
    %c0_6 = arith.constant 0 : index
    %c0_7 = arith.constant 0 : index
    %9 = vector.load %arg4[%c0_6, %c0_7] : memref<256x128xbf16, #tpu.memory_space<vmem>>, vector<256x128xbf16>
    %cst_8 = arith.constant dense<0.000000e+00> : vector<16x128xf32>
    %10 = tpu.matmul %8, %9, %cst_8 {dimension_numbers = #tpu.dot_dimension_numbers<[1], [0], [0], [1], [0, 0, 1, 1], [], []>} : vector<16x256xbf16>, vector<256x128xbf16>, vector<16x128xf32> -> vector<16x128xf32>
    %c0_9 = arith.constant 0 : index
    %c0_10 = arith.constant 0 : index
    %11 = vector.load %arg5[%c0_9, %c0_10] : memref<1x128xf32, #tpu.memory_space<vmem>>, vector<1x128xf32>
    %12 = vector.broadcast %11 : vector<1x128xf32> to vector<16x128xf32>
    %13 = arith.addf %10, %12 : vector<16x128xf32>
    %cst_11 = arith.constant 0.000000e+00 : f32
    %14 = vector.broadcast %cst_11 : f32 to vector<16x128xf32>
    %15 = arith.maximumf %13, %14 : vector<16x128xf32>
    %16 = arith.truncf %15 : vector<16x128xf32> to vector<16x128xbf16>
    %c0_12 = arith.constant 0 : index
    %c0_13 = arith.constant 0 : index
    %17 = vector.load %arg6[%c0_12, %c0_13] : memref<128x128xbf16, #tpu.memory_space<vmem>>, vector<128x128xbf16>
    %cst_14 = arith.constant dense<0.000000e+00> : vector<16x128xf32>
    %18 = tpu.matmul %16, %17, %cst_14 {dimension_numbers = #tpu.dot_dimension_numbers<[1], [0], [0], [1], [0, 0, 1, 1], [], []>} : vector<16x128xbf16>, vector<128x128xbf16>, vector<16x128xf32> -> vector<16x128xf32>
    %c0_15 = arith.constant 0 : index
    %c0_16 = arith.constant 0 : index
    %19 = vector.load %arg7[%c0_15, %c0_16] : memref<1x128xf32, #tpu.memory_space<vmem>>, vector<1x128xf32>
    %20 = vector.broadcast %19 : vector<1x128xf32> to vector<16x128xf32>
    %21 = arith.addf %18, %20 : vector<16x128xf32>
    %22 = arith.truncf %21 : vector<16x128xf32> to vector<16x128xbf16>
    %c0_17 = arith.constant 0 : index
    %c0_18 = arith.constant 0 : index
    %23 = vector.load %arg8[%c0_17, %c0_18] : memref<16x128xbf16, #tpu.memory_space<vmem>>, vector<16x128xbf16>
    tpu.vector_store %arg8[%c0_17, %c0_18], %22 {strides = array<i32>} : memref<16x128xbf16, #tpu.memory_space<vmem>>, vector<16x128xbf16>,
    return
  }
  func.func @transform_0(%arg0: i32) -> (i32, i32) {
    %c0_i32 = arith.constant 0 : i32
    %c0_i32_0 = arith.constant 0 : i32
    return %arg0, %c0_i32 : i32, i32
  }
  func.func @transform_1(%arg0: i32) -> (i32, i32) {
    %c0_i32 = arith.constant 0 : i32
    %c0_i32_0 = arith.constant 0 : i32
    %c0_i32_1 = arith.constant 0 : i32
    return %c0_i32, %c0_i32_0 : i32, i32
  }
  func.func @transform_2(%arg0: i32) -> (i32, i32) {
    %c0_i32 = arith.constant 0 : i32
    %c0_i32_0 = arith.constant 0 : i32
    %c0_i32_1 = arith.constant 0 : i32
    return %c0_i32, %c0_i32_0 : i32, i32
  }
  func.func @transform_3(%arg0: i32) -> (i32, i32) {
    %c0_i32 = arith.constant 0 : i32
    %c0_i32_0 = arith.constant 0 : i32
    %c0_i32_1 = arith.constant 0 : i32
    return %c0_i32, %c0_i32_0 : i32, i32
  }
  func.func @transform_4(%arg0: i32) -> (i32, i32) {
    %c0_i32 = arith.constant 0 : i32
    %c0_i32_0 = arith.constant 0 : i32
    %c0_i32_1 = arith.constant 0 : i32
    return %c0_i32, %c0_i32_0 : i32, i32
  }
  func.func @transform_5(%arg0: i32) -> (i32, i32) {
    %c0_i32 = arith.constant 0 : i32
    %c0_i32_0 = arith.constant 0 : i32
    %c0_i32_1 = arith.constant 0 : i32
    return %c0_i32, %c0_i32_0 : i32, i32
  }
  func.func @transform_6(%arg0: i32) -> (i32, i32) {
    %c0_i32 = arith.constant 0 : i32
    %c0_i32_0 = arith.constant 0 : i32
    %c0_i32_1 = arith.constant 0 : i32
    return %c0_i32, %c0_i32_0 : i32, i32
  }
  func.func @transform_7(%arg0: i32) -> (i32, i32) {
    %c0_i32 = arith.constant 0 : i32
    %c0_i32_0 = arith.constant 0 : i32
    return %arg0, %c0_i32 : i32, i32
  }
}

</mosaic_0001>

<bundles_post_ra>
// kernel: mlp_forward.1
= control target key start
LH: loop header
LB: loop body
LE: loop exit
PB: predicated region body
PF: predicated region fallthrough
CT: control target
= control target key end

     0   :  { %12 = vsyncpa [#allocation3], 0  ;;  %s2033_s0 = inlined_call_operand.vmem [shape: bf16[16,784], index: 0, kind: input, shape index: {}]   ;;  %s2034_s1 = inlined_call_operand.hbm [shape: bf16[784,256], index: 1, kind: input, shape index: {}]   ;;  %s2035_s2 = inlined_call_operand.vmem [shape: f32[1,256], index: 2, kind: input, shape index: {}]   ;;  %s2036_s3 = inlined_call_operand.hbm [shape: bf16[256,128], index: 3, kind: input, shape index: {}]   ;;  %s2037_s4 = inlined_call_operand.vmem [shape: f32[1,128], index: 4, kind: input, shape index: {}]   ;;  %s2038_s5 = inlined_call_operand.vmem [shape: bf16[128,128], index: 5, kind: input, shape index: {}]   ;;  %s2039_s6 = inlined_call_operand.vmem [shape: f32[1,128], index: 6, kind: input, shape index: {}]   ;;  %s2040_s7 = inlined_call_operand.vmem [shape: bf16[16,128], index: 7, kind: output, shape index: {}]  }
   0x1   :  { %s20_s26 = sshll.u32 %s2034_s1, 4  ;;  %s21_s26 = int_to_ptr.hbm [resolvable:$true] %s20_s26 }
   0x2   :  { %13 = vsyncpa [#allocation5], 0  ;;  %s1869_s27 = smov [#allocation2]   ;;  %s35_s8 = sshll.u32 %s2036_s3, 4  ;;  %s36_s8 = int_to_ptr.hbm [resolvable:$true] %s35_s8 }
   0x3   :  { %s22_s28 = sshll.u32 %s1869_s27, 4  ;;  %s1870_s9 = smov 128   ;;  %s23_s28 = int_to_ptr.vmem [resolvable:$true] %s22_s28 }
   0x4   :  { %s1871_s10 = smov 8   ;;  %s1872_s11 = smov [#allocation4]  }
   0x5   :  { %28 = dma.hbm_to_vmem [thread:$0]  %s21_s26, 12544, %s23_s28, [#allocation3], %s1870_s9, %s1870_s9, %s1871_s10  }
   0x6   :  { %s37_s12 = sshll.u32 %s1872_s11, 4  ;;  %s1873_s13 = smov 64   ;;  %s38_s12 = int_to_ptr.vmem [resolvable:$true] %s37_s12 }
   0x7   :  { %s1874_s14 = smov 4  }
   0x8   :  { %43 = dma.hbm_to_vmem [thread:$0]  %s36_s8, 2048, %s38_s12, [#allocation5], %s1873_s13, %s1873_s13, %s1874_s14  }
   0x9   :  { %1865 = dma.done.wait [#allocation3], 12544  }
   0xa   :  { %1866 = vsyncadd [#allocation3], 4294954752 }
   0xb   :  { %1867 = dma.done.wait [#allocation5], 2048  }
   0xc   :  { %1868 = vsyncadd [#allocation5], 4294965248  ;;  %v1243_v0 = vld [vmem:[#allocation2 + $0x70] sm:$0xf]  ;;  %v1697_v1 = vld [vmem:[#allocation2 + $0x74] sm:$0xf0] }
   0xd   :  { %v1371_v2 = vld [vmem:[#allocation2 + $0x170] sm:$0xf]  ;;  %v1244_v3 = vor.u32 %v1697_v1, %v1243_v0  ;;  %v1729_v4 = vld [vmem:[#allocation2 + $0x174] sm:$0xf0]  ;;  %v1235_v11 = vld [vmem:[#allocation2 + $0x60] sm:$0xf] }
   0xe   :  { %v1435_v5 = vld [vmem:[#allocation2 + $0x1f0] sm:$0xf]  ;;  %v1745_v6 = vld [vmem:[#allocation2 + $0x1f4] sm:$0xf0]  ;;  %v1372_v7 = vor.u32 %v1729_v4, %v1371_v2  ;;  %v1695_v13 = vld [vmem:[#allocation2 + $0x64] sm:$0xf0] }
   0xf   :  { %v1436_v8 = vor.u32 %v1745_v6, %v1435_v5  ;;  %v1307_v9 = vld [vmem:[#allocation2 + $0xf0] sm:$0xf]  ;;  %v1713_v10 = vld [vmem:[#allocation2 + $0xf4] sm:$0xf0]  ;;  %700 = vmatpush.bf16.msra.mxu0 %v1244_v3  ;;  %v1363_v14 = vld [vmem:[#allocation2 + $0x160] sm:$0xf]  ;;  %v1236_v16 = vor.u32 %v1695_v13, %v1235_v11 }
  0x10   :  { %v1308_v12 = vor.u32 %v1713_v10, %v1307_v9  ;;  %v1727_v15 = vld [vmem:[#allocation2 + $0x164] sm:$0xf0]  ;;  %728 = vmatpush.bf16.msra.mxu2 %v1372_v7  ;;  %v1427_v18 = vld [vmem:[#allocation2 + $0x1e0] sm:$0xf]  ;;  %v1227_v23 = vld [vmem:[#allocation2 + $0x50] sm:$0xf] }
  0x11   :  { %742 = vmatpush.bf16.msra.mxu3 %v1436_v8  ;;  %v1364_v17 = vor.u32 %v1727_v15, %v1363_v14  ;;  %v1743_v19 = vld [vmem:[#allocation2 + $0x1e4] sm:$0xf0]  ;;  %v1299_v20 = vld [vmem:[#allocation2 + $0xe0] sm:$0xf]  ;;  %v1693_v24 = vld [vmem:[#allocation2 + $0x54] sm:$0xf0] }
  0x12   :  { %714 = vmatpush.bf16.msra.mxu1 %v1308_v12  ;;  %v1428_v21 = vor.u32 %v1743_v19, %v1427_v18  ;;  %v1711_v22 = vld [vmem:[#allocation2 + $0xe4] sm:$0xf0]  ;;  %v1355_v26 = vld [vmem:[#allocation2 + $0x150] sm:$0xf]  ;;  %v1725_v27 = vld [vmem:[#allocation2 + $0x154] sm:$0xf0]  ;;  %v1228_v29 = vor.u32 %v1693_v24, %v1227_v23 }
  0x13   :  { %v1300_v25 = vor.u32 %v1711_v22, %v1299_v20  ;;  %v1419_v28 = vld [vmem:[#allocation2 + $0x1d0] sm:$0xf]  ;;  %701 = vmatpush.bf16.msra.mxu0 %v1236_v16  ;;  %v1741_v30 = vld [vmem:[#allocation2 + $0x1d4] sm:$0xf0]  ;;  %v1356_v33 = vor.u32 %v1725_v27, %v1355_v26  ;;  %v1219_v35 = vld [vmem:[#allocation2 + $0x40] sm:$0xf] }
  0x14   :  { %v1291_v31 = vld [vmem:[#allocation2 + $0xd0] sm:$0xf]  ;;  %v1709_v32 = vld [vmem:[#allocation2 + $0xd4] sm:$0xf0]  ;;  %729 = vmatpush.bf16.msra.mxu2 %v1364_v17  ;;  %v1420_v34 = vor.u32 %v1741_v30, %v1419_v28  ;;  %v1691_v36 = vld [vmem:[#allocation2 + $0x44] sm:$0xf0] }
  0x15   :  { %743 = vmatpush.bf16.msra.mxu3 %v1428_v21  ;;  %v1347_v37 = vld [vmem:[#allocation2 + $0x140] sm:$0xf]  ;;  %v1292_v38 = vor.u32 %v1709_v32, %v1291_v31  ;;  %v1723_v39 = vld [vmem:[#allocation2 + $0x144] sm:$0xf0]  ;;  %v1220_v44 = vor.u32 %v1691_v36, %v1219_v35  ;;  %v1211_v47 = vld [vmem:[#allocation2 + $0x30] sm:$0xf] }
  0x16   :  { %715 = vmatpush.bf16.msra.mxu1 %v1300_v25  ;;  %v1411_v40 = vld [vmem:[#allocation2 + $0x1c0] sm:$0xf]  ;;  %v1739_v41 = vld [vmem:[#allocation2 + $0x1c4] sm:$0xf0]  ;;  %v1348_v45 = vor.u32 %v1723_v39, %v1347_v37  ;;  %v1689_v48 = vld [vmem:[#allocation2 + $0x34] sm:$0xf0] }
  0x17   :  { %v1283_v42 = vld [vmem:[#allocation2 + $0xc0] sm:$0xf]  ;;  %v1707_v43 = vld [vmem:[#allocation2 + $0xc4] sm:$0xf0]  ;;  %702 = vmatpush.bf16.msra.mxu0 %v1228_v29  ;;  %v1412_v46 = vor.u32 %v1739_v41, %v1411_v40  ;;  %v1339_v49 = vld [vmem:[#allocation2 + $0x130] sm:$0xf]  ;;  %v1212_v56 = vor.u32 %v1689_v48, %v1211_v47 }
  0x18   :  { %730 = vmatpush.bf16.msra.mxu2 %v1356_v33  ;;  %v1284_v50 = vor.u32 %v1707_v43, %v1283_v42  ;;  %v1721_v51 = vld [vmem:[#allocation2 + $0x134] sm:$0xf0]  ;;  %v1403_v52 = vld [vmem:[#allocation2 + $0x1b0] sm:$0xf]  ;;  %v1203_v59 = vld [vmem:[#allocation2 + $0x20] sm:$0xf] }
  0x19   :  { %744 = vmatpush.bf16.msra.mxu3 %v1420_v34  ;;  %v1737_v53 = vld [vmem:[#allocation2 + $0x1b4] sm:$0xf0]  ;;  %v1275_v54 = vld [vmem:[#allocation2 + $0xb0] sm:$0xf]  ;;  %v1340_v57 = vor.u32 %v1721_v51, %v1339_v49  ;;  %v1687_v60 = vld [vmem:[#allocation2 + $0x24] sm:$0xf0] }
  0x1a   :  { %716 = vmatpush.bf16.msra.mxu1 %v1292_v38  ;;  %v1705_v55 = vld [vmem:[#allocation2 + $0xb4] sm:$0xf0]  ;;  %v1404_v58 = vor.u32 %v1737_v53, %v1403_v52  ;;  %v1331_v61 = vld [vmem:[#allocation2 + $0x120] sm:$0xf]  ;;  %v1719_v63 = vld [vmem:[#allocation2 + $0x124] sm:$0xf0]  ;;  %v1204_v4 = vor.u32 %v1687_v60, %v1203_v59 }
  0x1b   :  { %703 = vmatpush.bf16.msra.mxu0 %v1220_v44  ;;  %v1276_v62 = vor.u32 %v1705_v55, %v1275_v54  ;;  %v1395_v0 = vld [vmem:[#allocation2 + $0x1a0] sm:$0xf]  ;;  %v1735_v1 = vld [vmem:[#allocation2 + $0x1a4] sm:$0xf0]  ;;  %v1195_v5 = vld [vmem:[#allocation2 + $0x10] sm:$0xf]  ;;  %v1332_v6 = vor.u32 %v1719_v63, %v1331_v61 }
  0x1c   :  { %731 = vmatpush.bf16.msra.mxu2 %v1348_v45  ;;  %v1267_v2 = vld [vmem:[#allocation2 + $0xa0] sm:$0xf]  ;;  %v1703_v3 = vld [vmem:[#allocation2 + $0xa4] sm:$0xf0]  ;;  %v1396_v7 = vor.u32 %v1735_v1, %v1395_v0  ;;  %v1685_v8 = vld [vmem:[#allocation2 + $0x14] sm:$0xf0] }
  0x1d   :  { %745 = vmatpush.bf16.msra.mxu3 %v1412_v46  ;;  %v1323_v9 = vld [vmem:[#allocation2 + $0x110] sm:$0xf]  ;;  %v1717_v10 = vld [vmem:[#allocation2 + $0x114] sm:$0xf0]  ;;  %v1268_v11 = vor.u32 %v1703_v3, %v1267_v2  ;;  %v1187_v16 = vld [vmem:[#allocation2] sm:$0xf]  ;;  %v1196_v18 = vor.u32 %v1685_v8, %v1195_v5 }
  0x1e   :  { %717 = vmatpush.bf16.msra.mxu1 %v1284_v50  ;;  %v1387_v12 = vld [vmem:[#allocation2 + $0x190] sm:$0xf]  ;;  %v1733_v13 = vld [vmem:[#allocation2 + $0x194] sm:$0xf0]  ;;  %v1683_v17 = vld [vmem:[#allocation2 + $0x4] sm:$0xf0]  ;;  %v1324_v23 = vor.u32 %v1717_v10, %v1323_v9 }
  0x1f   :  { %704 = vmatpush.bf16.msra.mxu0 %v1212_v56  ;;  %v1259_v14 = vld [vmem:[#allocation2 + $0x90] sm:$0xf]  ;;  %v1701_v15 = vld [vmem:[#allocation2 + $0x94] sm:$0xf0]  ;;  %v1315_v19 = vld [vmem:[#allocation2 + $0x100] sm:$0xf]  ;;  %v1388_v24 = vor.u32 %v1733_v13, %v1387_v12  ;;  %v1188_v35 = vor.u32 %v1683_v17, %v1187_v16 }
  0x20   :  { %732 = vmatpush.bf16.msra.mxu2 %v1340_v57  ;;  %v1715_v20 = vld [vmem:[#allocation2 + $0x104] sm:$0xf0]  ;;  %v1379_v21 = vld [vmem:[#allocation2 + $0x180] sm:$0xf]  ;;  %v1499_v25 = vld [vmem:[#allocation2 + $0x270] sm:$0xf]  ;;  %v1260_v28 = vor.u32 %v1701_v15, %v1259_v14 }
  0x21   :  { %746 = vmatpush.bf16.msra.mxu3 %v1404_v58  ;;  %v1731_v22 = vld [vmem:[#allocation2 + $0x184] sm:$0xf0]  ;;  %v1761_v26 = vld [vmem:[#allocation2 + $0x274] sm:$0xf0]  ;;  %v1696_v27 = vld [vmem:[#allocation2 + $0x74] sm:$0xf]  ;;  %v1316_v39 = vor.u32 %v1715_v20, %v1315_v19 }
  0x22   :  { %718 = vmatpush.bf16.msra.mxu1 %v1276_v62  ;;  %v1245_v29 = vld [vmem:[#allocation2 + $0x78] sm:$0xf0]  ;;  %v1251_v30 = vld [vmem:[#allocation2 + $0x80] sm:$0xf]  ;;  %v1699_v31 = vld [vmem:[#allocation2 + $0x84] sm:$0xf0]  ;;  %v1380_v40 = vor.u32 %v1731_v22, %v1379_v21  ;;  %v1500_v44 = vor.u32 %v1761_v26, %v1499_v25 }
  0x23   :  { %705 = vmatpush.bf16.msra.mxu0 %v1204_v4  ;;  %v1167_v32 = vld [vmem:[%s2033_s0 + $0x8] sm:$0xf]  ;;  %v1679_v33 = vld [vmem:[%s2033_s0 + $0x20] sm:$0xf0]  ;;  %v1563_v34 = vld [vmem:[#allocation2 + $0x2f0] sm:$0xf]  ;;  %v1248_v45 = vor.u32 %v1696_v27, %v1245_v29  ;;  %v1252_v49 = vor.u32 %v1699_v31, %v1251_v30 }
  0x24   :  { %733 = vmatpush.bf16.msra.mxu2 %v1332_v6  ;;  %v1777_v36 = vld [vmem:[#allocation2 + $0x2f4] sm:$0xf0]  ;;  %v1571_v37 = vld [vmem:[#allocation2 + $0x300] sm:$0xf]  ;;  %v1779_v38 = vld [vmem:[#allocation2 + $0x304] sm:$0xf0]  ;;  %v1939_v54 = vor.u32 %v1679_v33, %v1167_v32 }
  0x25   :  { %747 = vmatpush.bf16.msra.mxu3 %v1396_v7  ;;  %v1712_v41 = vld [vmem:[#allocation2 + $0xf4] sm:$0xf]  ;;  %v1309_v42 = vld [vmem:[#allocation2 + $0xf8] sm:$0xf0]  ;;  %v1159_v43 = vld [vmem:[%s2033_s0] sm:$0xf]  ;;  %v1572_v50 = vor.u32 %v1779_v38, %v1571_v37  ;;  %v1564_v55 = vor.u32 %v1777_v36, %v1563_v34 }
  0x26   :  { %719 = vmatpush.bf16.msra.mxu1 %v1268_v11  ;;  %v1678_v46 = vld [vmem:[%s2033_s0 + $0x18] sm:$0xf0]  ;;  %v1676_v47 = vld [vmem:[%s2033_s0 + $0xc] sm:$0xf]  ;;  %v1169_v48 = vld [vmem:[%s2033_s0 + $0x24] sm:$0xf0]  ;;  %v1312_v59 = vor.u32 %v1712_v41, %v1309_v42 }
  0x27   :  { %706 = vmatpush.bf16.msra.mxu0 %v1196_v18  ;;  %v1491_v51 = vld [vmem:[#allocation2 + $0x260] sm:$0xf]  ;;  %v1759_v52 = vld [vmem:[#allocation2 + $0x264] sm:$0xf0]  ;;  %v1694_v53 = vld [vmem:[#allocation2 + $0x64] sm:$0xf]  ;;  %v1947_v60 = vor.u32 %v1678_v46, %v1159_v43  ;;  %v1949_v63 = vor.u32 %v1676_v47, %v1169_v48 }
  0x28   :  { %734 = vmatpush.bf16.msra.mxu2 %v1324_v23  ;;  %v1237_v56 = vld [vmem:[#allocation2 + $0x68] sm:$0xf0]  ;;  %v1675_v57 = vld [vmem:[%s2033_s0 + $0x4] sm:$0xf]  ;;  %v1161_v58 = vld [vmem:[%s2033_s0 + $0x1c] sm:$0xf0]  ;;  %v1492_v0 = vor.u32 %v1759_v52, %v1491_v51 }
  0x29   :  { %748 = vmatpush.bf16.msra.mxu3 %v1388_v24  ;;  %v1555_v61 = vld [vmem:[#allocation2 + $0x2e0] sm:$0xf]  ;;  %v1775_v62 = vld [vmem:[#allocation2 + $0x2e4] sm:$0xf0]  ;;  %v1710_v1 = vld [vmem:[#allocation2 + $0xe4] sm:$0xf]  ;;  %v1240_v3 = vor.u32 %v1694_v53, %v1237_v56  ;;  %v1951_v4 = vor.u32 %v1675_v57, %v1161_v58 }
  0x2a   :  { %720 = vmatpush.bf16.msra.mxu1 %v1260_v28  ;;  %v1301_v2 = vld [vmem:[#allocation2 + $0xe8] sm:$0xf0]  ;;  %v1483_v5 = vld [vmem:[#allocation2 + $0x250] sm:$0xf]  ;;  %v1757_v6 = vld [vmem:[#allocation2 + $0x254] sm:$0xf0]  ;;  %v1556_v7 = vor.u32 %v1775_v62, %v1555_v61 }
  0x2b   :  { %707 = vmatpush.bf16.msra.mxu0 %v1188_v35  ;;  %v1692_v8 = vld [vmem:[#allocation2 + $0x54] sm:$0xf]  ;;  %v1229_v9 = vld [vmem:[#allocation2 + $0x58] sm:$0xf0]  ;;  %v1304_v10 = vor.u32 %v1710_v1, %v1301_v2  ;;  %v1547_v11 = vld [vmem:[#allocation2 + $0x2d0] sm:$0xf]  ;;  %v1484_v13 = vor.u32 %v1757_v6, %v1483_v5 }
  0x2c   :  { %735 = vmatpush.bf16.msra.mxu2 %v1316_v39  ;;  %v1773_v12 = vld [vmem:[#allocation2 + $0x2d4] sm:$0xf0]  ;;  %v1708_v14 = vld [vmem:[#allocation2 + $0xd4] sm:$0xf]  ;;  %v1293_v15 = vld [vmem:[#allocation2 + $0xd8] sm:$0xf0]  ;;  %v1232_v16 = vor.u32 %v1692_v8, %v1229_v9 }
  0x2d   :  { %749 = vmatpush.bf16.msra.mxu3 %v1380_v40  ;;  %v1475_v17 = vld [vmem:[#allocation2 + $0x240] sm:$0xf]  ;;  %v1755_v18 = vld [vmem:[#allocation2 + $0x244] sm:$0xf0]  ;;  %v1548_v19 = vor.u32 %v1773_v12, %v1547_v11  ;;  %v1690_v20 = vld [vmem:[#allocation2 + $0x44] sm:$0xf]  ;;  %v1296_v22 = vor.u32 %v1708_v14, %v1293_v15 }
  0x2e   :  { %721 = vmatpush.bf16.msra.mxu1 %v1252_v49  ;;  %708 = vmatmul.bf16.vlgmr.msra.gmra.mxu0 %v1947_v60  ;;  %v1221_v21 = vld [vmem:[#allocation2 + $0x48] sm:$0xf0]  ;;  %v1539_v23 = vld [vmem:[#allocation2 + $0x2c0] sm:$0xf]  ;;  %v1771_v24 = vld [vmem:[#allocation2 + $0x2c4] sm:$0xf0]  ;;  %v1476_v25 = vor.u32 %v1755_v18, %v1475_v17 }
  0x2f   :  { %756 = vmatpush.bf16.msrb.mxu0 %v1500_v44  ;;  %736 = vmatmul.bf16.vlgmr.msra.gmra.mxu2 %v1939_v54  ;;  %v1706_v26 = vld [vmem:[#allocation2 + $0xc4] sm:$0xf]  ;;  %v1285_v27 = vld [vmem:[#allocation2 + $0xc8] sm:$0xf0]  ;;  %v1224_v28 = vor.u32 %v1690_v20, %v1221_v21  ;;  %v1467_v29 = vld [vmem:[#allocation2 + $0x230] sm:$0xf]  ;;  %v1540_v31 = vor.u32 %v1771_v24, %v1539_v23 }
  0x30   :  { %791 = vmatpush.bf16.msrb.mxu2 %v1572_v50  ;;  %750 = vmatmul.bf16.vlgmr.msra.gmra.mxu3 %v1949_v63  ;;  %v1753_v30 = vld [vmem:[#allocation2 + $0x234] sm:$0xf0]  ;;  %v1688_v32 = vld [vmem:[#allocation2 + $0x34] sm:$0xf]  ;;  %v1213_v33 = vld [vmem:[#allocation2 + $0x38] sm:$0xf0]  ;;  %v1288_v35 = vor.u32 %v1706_v26, %v1285_v27 }
  0x31   :  { %798 = vmatpush.bf16.msrb.mxu3 %v1248_v45  ;;  %722 = vmatmul.bf16.vlgmr.msra.gmra.mxu1 %v1951_v4  ;;  %v1531_v34 = vld [vmem:[#allocation2 + $0x2b0] sm:$0xf]  ;;  %v1769_v36 = vld [vmem:[#allocation2 + $0x2b4] sm:$0xf0]  ;;  %v1681_v38 = vld [vmem:[%s2033_s0 + $0x30] sm:$0xf0]  ;;  %v1468_v39 = vor.u32 %v1753_v30, %v1467_v29  ;;  %v1216_v42 = vor.u32 %v1688_v32, %v1213_v33 }
  0x32   :  { %770 = vmatpush.bf16.msrb.mxu1 %v1564_v55  ;;  %v1183_v37 = vld [vmem:[%s2033_s0 + $0x18] sm:$0xf]  ;;  %v1704_v40 = vld [vmem:[#allocation2 + $0xb4] sm:$0xf]  ;;  %v1277_v41 = vld [vmem:[#allocation2 + $0xb8] sm:$0xf0]  ;;  %v1532_v45 = vor.u32 %v1769_v36, %v1531_v34 }
  0x33   :  { %757 = vmatpush.bf16.msrb.mxu0 %v1492_v0  ;;  %v1459_v43 = vld [vmem:[#allocation2 + $0x220] sm:$0xf]  ;;  %v1751_v44 = vld [vmem:[#allocation2 + $0x224] sm:$0xf0]  ;;  %v1686_v46 = vld [vmem:[#allocation2 + $0x24] sm:$0xf]  ;;  %v1963_v48 = vor.u32 %v1681_v38, %v1183_v37  ;;  %v1280_v49 = vor.u32 %v1704_v40, %v1277_v41 }
  0x34   :  { %812 = vmatpush.bf16.msra.mxu2 %v1312_v59  ;;  %v1205_v47 = vld [vmem:[#allocation2 + $0x28] sm:$0xf0]  ;;  %v1523_v50 = vld [vmem:[#allocation2 + $0x2a0] sm:$0xf]  ;;  %v1767_v51 = vld [vmem:[#allocation2 + $0x2a4] sm:$0xf0]  ;;  %v1460_v52 = vor.u32 %v1751_v44, %v1459_v43 }
  0x35   :  { %799 = vmatpush.bf16.msrb.mxu3 %v1240_v3  ;;  %vm696_vm0 = vcmask 130048   ;;  %v1702_v53 = vld [vmem:[#allocation2 + $0xa4] sm:$0xf]  ;;  %v1269_v55 = vld [vmem:[#allocation2 + $0xa8] sm:$0xf0]  ;;  %v1208_v56 = vor.u32 %v1686_v46, %v1205_v47  ;;  %v1524_v61 = vor.u32 %v1767_v51, %v1523_v50 }
  0x36   :  { %771 = vmatpush.bf16.msrb.mxu1 %v1556_v7  ;;  %v1451_v57 = vld [vmem:[#allocation2 + $0x210] sm:$0xf]  ;;  %v1749_v58 = vld [vmem:[#allocation2 + $0x214] sm:$0xf0]  ;;  %v1684_v59 = vld [vmem:[#allocation2 + $0x14] sm:$0xf]  ;;  %v1272_v2 = vor.u32 %v1702_v53, %v1269_v55 }
  0x37   :  { %758 = vmatpush.bf16.msrb.mxu0 %v1484_v13  ;;  %v1197_v62 = vld [vmem:[#allocation2 + $0x18] sm:$0xf0]  ;;  %v1515_v0 = vld [vmem:[#allocation2 + $0x290] sm:$0xf]  ;;  %v1765_v1 = vld [vmem:[#allocation2 + $0x294] sm:$0xf0]  ;;  %v1452_v7 = vor.u32 %v1749_v58, %v1451_v57 }
  0x38   :  { %813 = vmatpush.bf16.msra.mxu2 %v1304_v10  ;;  %v1700_v3 = vld [vmem:[#allocation2 + $0x94] sm:$0xf]  ;;  %v1261_v5 = vld [vmem:[#allocation2 + $0x98] sm:$0xf0]  ;;  %v1443_v6 = vld [vmem:[#allocation2 + $0x200] sm:$0xf]  ;;  %v1200_v11 = vor.u32 %v1684_v59, %v1197_v62  ;;  %v1516_v15 = vor.u32 %v1765_v1, %v1515_v0 }
  0x39   :  { %800 = vmatpush.bf16.msrb.mxu3 %v1232_v16  ;;  %v1747_v8 = vld [vmem:[#allocation2 + $0x204] sm:$0xf0]  ;;  %v1682_v9 = vld [vmem:[#allocation2 + $0x4] sm:$0xf]  ;;  %v1189_v10 = vld [vmem:[#allocation2 + $0x8] sm:$0xf0] }
  0x3a   :  { %772 = vmatpush.bf16.msrb.mxu1 %v1548_v19  ;;  %v1728_v12 = vld [vmem:[#allocation2 + $0x174] sm:$0xf]  ;;  %v1373_v13 = vld [vmem:[#allocation2 + $0x178] sm:$0xf0]  ;;  %v1507_v17 = vld [vmem:[#allocation2 + $0x280] sm:$0xf]  ;;  %v1264_v19 = vor.u32 %v1700_v3, %v1261_v5  ;;  %v1444_v23 = vor.u32 %v1747_v8, %v1443_v6  ;;  %v1192_v27 = vor.u32 %v1682_v9, %v1189_v10 }
  0x3b   :  { %759 = vmatpush.bf16.msrb.mxu0 %v1476_v25  ;;  %v1760_v14 = vld [vmem:[#allocation2 + $0x274] sm:$0xf]  ;;  %v1501_v16 = vld [vmem:[#allocation2 + $0x278] sm:$0xf0]  ;;  %v1763_v18 = vld [vmem:[#allocation2 + $0x284] sm:$0xf0] }
  0x3c   :  { %814 = vmatpush.bf16.msra.mxu2 %v1296_v22  ;;  %v1175_v20 = vld [vmem:[%s2033_s0 + $0x10] sm:$0xf]  ;;  %v1680_v21 = vld [vmem:[%s2033_s0 + $0x28] sm:$0xf0]  ;;  %v1698_v22 = vld [vmem:[#allocation2 + $0x84] sm:$0xf]  ;;  %v1504_v32 = vor.u32 %v1760_v14, %v1501_v16  ;;  %v1508_v33 = vor.u32 %v1763_v18, %v1507_v17 }
  0x3d   :  { %801 = vmatpush.bf16.msrb.mxu3 %v1224_v28  ;;  %v1253_v24 = vld [vmem:[#allocation2 + $0x88] sm:$0xf0]  ;;  %v1744_v25 = vld [vmem:[#allocation2 + $0x1f4] sm:$0xf]  ;;  %v1437_v26 = vld [vmem:[#allocation2 + $0x1f8] sm:$0xf0]  ;;  %v1376_v28 = vor.u32 %v1728_v12, %v1373_v13  ;;  %v1979_v37 = vor.u32 %v1680_v21, %v1175_v20 }
  0x3e   :  { %773 = vmatpush.bf16.msrb.mxu1 %v1540_v31  ;;  %v1776_v29 = vld [vmem:[#allocation2 + $0x2f4] sm:$0xf]  ;;  %v1565_v30 = vld [vmem:[#allocation2 + $0x2f8] sm:$0xf0]  ;;  %v1177_v34 = vld [vmem:[%s2033_s0 + $0x2c] sm:$0xf0]  ;;  %v1256_v38 = vor.u32 %v1698_v22, %v1253_v24  ;;  %v1440_v41 = vor.u32 %v1744_v25, %v1437_v26 }
  0x3f   :  { %760 = vmatpush.bf16.msrb.mxu0 %v1468_v39  ;;  %1577 = vmatmul.msk.bf16.vlgmr.msrb.gmra.mxu2 %vm696_vm0, %v1963_v48  ;;  %v1677_v31 = vld [vmem:[%s2033_s0 + $0x14] sm:$0xf]  ;;  %v1365_v36 = vld [vmem:[#allocation2 + $0x168] sm:$0xf0]  ;;  %v1758_v39 = vld [vmem:[#allocation2 + $0x264] sm:$0xf] }
  0x40   :  { %815 = vmatpush.bf16.msra.mxu2 %v1288_v35  ;;  %v1726_v35 = vld [vmem:[#allocation2 + $0x164] sm:$0xf]  ;;  %v1493_v40 = vld [vmem:[#allocation2 + $0x268] sm:$0xf0]  ;;  %v1981_v44 = vor.u32 %v1677_v31, %v1177_v34  ;;  %v1724_v51 = vld [vmem:[#allocation2 + $0x154] sm:$0xf] }
  0x41   :  { %802 = vmatpush.bf16.msrb.mxu3 %v1216_v42  ;;  %v1568_v42 = vor.u32 %v1776_v29, %v1565_v30  ;;  %v1742_v43 = vld [vmem:[#allocation2 + $0x1e4] sm:$0xf]  ;;  %v1429_v46 = vld [vmem:[#allocation2 + $0x1e8] sm:$0xf0]  ;;  %v1496_v50 = vor.u32 %v1758_v39, %v1493_v40  ;;  %v1756_v53 = vld [vmem:[#allocation2 + $0x254] sm:$0xf] }
  0x42   :  { %774 = vmatpush.bf16.msrb.mxu1 %v1532_v45  ;;  %v1368_v45 = vor.u32 %v1726_v35, %v1365_v36  ;;  %v1774_v47 = vld [vmem:[#allocation2 + $0x2e4] sm:$0xf]  ;;  %v1485_v55 = vld [vmem:[#allocation2 + $0x258] sm:$0xf0]  ;;  %v1740_v58 = vld [vmem:[#allocation2 + $0x1d4] sm:$0xf] }
  0x43   :  { %761 = vmatpush.bf16.msrb.mxu0 %v1460_v52  ;;  %v1357_v52 = vld [vmem:[#allocation2 + $0x158] sm:$0xf0]  ;;  %v1772_v62 = vld [vmem:[#allocation2 + $0x2d4] sm:$0xf]  ;;  %v1488_v1 = vor.u32 %v1756_v53, %v1485_v55  ;;  %v1349_v3 = vld [vmem:[#allocation2 + $0x148] sm:$0xf0] }
  0x44   :  { %816 = vmatpush.bf16.msra.mxu2 %v1280_v49  ;;  %v1557_v49 = vld [vmem:[#allocation2 + $0x2e8] sm:$0xf0]  ;;  %v1360_v59 = vor.u32 %v1724_v51, %v1357_v52  ;;  %v1549_v0 = vld [vmem:[#allocation2 + $0x2d8] sm:$0xf0]  ;;  %v1754_v5 = vld [vmem:[#allocation2 + $0x244] sm:$0xf] }
  0x45   :  { %803 = vmatpush.bf16.msrb.mxu3 %v1208_v56  ;;  %v1432_v56 = vor.u32 %v1742_v43, %v1429_v46  ;;  %v1560_v57 = vor.u32 %v1774_v47, %v1557_v49  ;;  %v1477_v6 = vld [vmem:[#allocation2 + $0x248] sm:$0xf0]  ;;  %v1552_v8 = vor.u32 %v1772_v62, %v1549_v0  ;;  %v1738_v9 = vld [vmem:[#allocation2 + $0x1c4] sm:$0xf]  ;;  %v1752_v16 = vld [vmem:[#allocation2 + $0x234] sm:$0xf] }
  0x46   :  { %775 = vmatpush.bf16.msrb.mxu1 %v1524_v61  ;;  %v1421_v61 = vld [vmem:[#allocation2 + $0x1d8] sm:$0xf0]  ;;  %v1413_v10 = vld [vmem:[#allocation2 + $0x1c8] sm:$0xf0]  ;;  %v1480_v14 = vor.u32 %v1754_v5, %v1477_v6  ;;  %v1768_v22 = vld [vmem:[#allocation2 + $0x2b4] sm:$0xf] }
  0x47   :  { %762 = vmatpush.bf16.msrb.mxu0 %v1452_v7  ;;  %v1424_v7 = vor.u32 %v1740_v58, %v1421_v61  ;;  %v1541_v13 = vld [vmem:[#allocation2 + $0x2c8] sm:$0xf0]  ;;  %v1469_v17 = vld [vmem:[#allocation2 + $0x238] sm:$0xf0]  ;;  %v1718_v25 = vld [vmem:[#allocation2 + $0x124] sm:$0xf] }
  0x48   :  { %817 = vmatpush.bf16.msra.mxu2 %v1272_v2  ;;  %v1722_v2 = vld [vmem:[#allocation2 + $0x144] sm:$0xf]  ;;  %v1405_v21 = vld [vmem:[#allocation2 + $0x1b8] sm:$0xf0]  ;;  %v1472_v24 = vor.u32 %v1752_v16, %v1469_v17  ;;  %v1333_v26 = vld [vmem:[#allocation2 + $0x128] sm:$0xf0] }
  0x49   :  { %804 = vmatpush.bf16.msrb.mxu3 %v1200_v11  ;;  %v1770_v11 = vld [vmem:[#allocation2 + $0x2c4] sm:$0xf]  ;;  %v1352_v12 = vor.u32 %v1722_v2, %v1349_v3  ;;  %v1525_v35 = vld [vmem:[#allocation2 + $0x2a8] sm:$0xf0]  ;;  %v1325_v39 = vld [vmem:[#allocation2 + $0x118] sm:$0xf0] }
  0x4a   :  { %776 = vmatpush.bf16.msrb.mxu1 %v1516_v15  ;;  %v1720_v15 = vld [vmem:[#allocation2 + $0x134] sm:$0xf]  ;;  %v1544_v18 = vor.u32 %v1770_v11, %v1541_v13  ;;  %v1734_v31 = vld [vmem:[#allocation2 + $0x1a4] sm:$0xf]  ;;  %v1389_v47 = vld [vmem:[#allocation2 + $0x198] sm:$0xf0] }
  0x4b   :  { %763 = vmatpush.bf16.msrb.mxu0 %v1444_v23  ;;  %v1533_v23 = vld [vmem:[#allocation2 + $0x2b8] sm:$0xf0]  ;;  %v1766_v34 = vld [vmem:[#allocation2 + $0x2a4] sm:$0xf]  ;;  %v1748_v40 = vld [vmem:[#allocation2 + $0x214] sm:$0xf] }
  0x4c   :  { %818 = vmatpush.bf16.msra.mxu2 %v1264_v19  ;;  %v1736_v19 = vld [vmem:[#allocation2 + $0x1b4] sm:$0xf]  ;;  %v1536_v30 = vor.u32 %v1768_v22, %v1533_v23  ;;  %v1528_v43 = vor.u32 %v1766_v34, %v1525_v35  ;;  %v1714_v52 = vld [vmem:[#allocation2 + $0x104] sm:$0xf]  ;;  %v1317_v53 = vld [vmem:[#allocation2 + $0x108] sm:$0xf0] }
  0x4d   :  { %805 = vmatpush.bf16.msrb.mxu3 %v1192_v27  ;;  %v1750_v27 = vld [vmem:[#allocation2 + $0x224] sm:$0xf]  ;;  %v1408_v29 = vor.u32 %v1736_v19, %v1405_v21  ;;  %v1764_v49 = vld [vmem:[#allocation2 + $0x294] sm:$0xf]  ;;  %v1381_v62 = vld [vmem:[#allocation2 + $0x188] sm:$0xf0] }
  0x4e   :  { %777 = vmatpush.bf16.msrb.mxu1 %v1508_v33  ;;  %764 = vmatmul.bf16.vlgmr.msrb.gmra.mxu0 %v1979_v37  ;;  %v1397_v33 = vld [vmem:[#allocation2 + $0x1a8] sm:$0xf0]  ;;  %v1746_v55 = vld [vmem:[#allocation2 + $0x204] sm:$0xf]  ;;  %v1785_v11 = vld [vmem:[#allocation4 + $0x28] sm:$0xff] }
  0x4f   :  { %826 = vmatpush.bf16.msra.mxu0 %v1376_v28  ;;  %v1461_v28 = vld [vmem:[#allocation2 + $0x228] sm:$0xf0]  ;;  %v1730_v61 = vld [vmem:[#allocation2 + $0x184] sm:$0xf]  ;;  %v1781_v13 = vld [vmem:[#allocation4 + $0x8] sm:$0xff] }
  0x50   :  { %819 = vmatpush.bf16.msra.mxu2 %v1256_v38  ;;  %806 = vmatmul.bf16.vlgmr.msrb.gmra.mxu3 %v1947_v60  ;;  %v1416_v60 = vor.u32 %v1738_v9, %v1413_v10  ;;  %v1464_v36 = vor.u32 %v1750_v27, %v1461_v28  ;;  %v1716_v38 = vld [vmem:[#allocation2 + $0x114] sm:$0xf]  ;;  %v1509_v2 = vld [vmem:[#allocation2 + $0x288] sm:$0xf0]  ;;  %v1778_v3 = vld [vmem:[#allocation2 + $0x304] sm:$0xf]  ;;  %v1384_v6 = vor.u32 %v1730_v61, %v1381_v62 }
  0x51   :  { %854 = vmatpush.bf16.msra.mxu3 %v1504_v32  ;;  %778 = vmatmul.bf16.vlgmr.msrb.gmra.mxu1 %v1981_v44  ;;  %v1336_v32 = vor.u32 %v1718_v25, %v1333_v26  ;;  %v1328_v46 = vor.u32 %v1716_v38, %v1325_v39  ;;  %v1573_v5 = vld [vmem:[#allocation2 + $0x308] sm:$0xf0]  ;;  %v1786_v10 = vld [vmem:[#allocation4 + $0x30] sm:$0xff] }
  0x52   :  { %840 = vmatpush.bf16.msra.mxu1 %v1440_v41  ;;  %v1453_v41 = vld [vmem:[#allocation2 + $0x218] sm:$0xf0]  ;;  %v1787_v9 = vld [vmem:[#allocation4 + $0x38] sm:$0xff] }
  0x53   :  { %827 = vmatpush.bf16.msra.mxu0 %v1368_v45  ;;  %820 = vmatmul.bf16.vlgmr.msra.gmra.mxu2 %v1951_v4  ;;  %v1341_v4 = vld [vmem:[#allocation2 + $0x138] sm:$0xf0]  ;;  %v1732_v45 = vld [vmem:[#allocation2 + $0x194] sm:$0xf]  ;;  %v1456_v51 = vor.u32 %v1748_v40, %v1453_v41 }
  0x54   :  { %868 = vmatpush.bf16.msrb.mxu2 %v1568_v42  ;;  %v1344_v20 = vor.u32 %v1720_v15, %v1341_v4  ;;  %v1400_v42 = vor.u32 %v1734_v31, %v1397_v33  ;;  %v1795_v31 = vld [vmem:[#allocation4 + $0x78] sm:$0xff] }
  0x55   :  { %855 = vmatpush.bf16.msra.mxu3 %v1496_v50  ;;  %v1517_v50 = vld [vmem:[#allocation2 + $0x298] sm:$0xf0] }
  0x56   :  { %841 = vmatpush.bf16.msra.mxu1 %v1432_v56  ;;  %v1445_v56 = vld [vmem:[#allocation2 + $0x208] sm:$0xf0]  ;;  %v1520_v58 = vor.u32 %v1764_v49, %v1517_v50 }
  0x57   :  { %828 = vmatpush.bf16.msra.mxu0 %v1360_v59  ;;  %v1320_v59 = vor.u32 %v1714_v52, %v1317_v53  ;;  %v1448_v0 = vor.u32 %v1746_v55, %v1445_v56  ;;  %v1790_v52 = vld [vmem:[#allocation4 + $0x50] sm:$0xff]  ;;  %v1789_v55 = vld [vmem:[#allocation4 + $0x48] sm:$0xff] }
  0x58   :  { %869 = vmatpush.bf16.msrb.mxu2 %v1560_v57  ;;  %v1392_v57 = vor.u32 %v1732_v45, %v1389_v47  ;;  %v1792_v47 = vld [vmem:[#allocation4 + $0x60] sm:$0xff] }
  0x59   :  { %856 = vmatpush.bf16.msra.mxu3 %v1488_v1  ;;  %v1762_v1 = vld [vmem:[#allocation2 + $0x284] sm:$0xf] }
  0x5a   :  { %842 = vmatpush.bf16.msra.mxu1 %v1424_v7  ;;  %v1512_v7 = vor.u32 %v1762_v1, %v1509_v2 }
  0x5b   :  { %829 = vmatpush.bf16.msra.mxu0 %v1352_v12  ;;  %v1784_v12 = vld [vmem:[#allocation4 + $0x20] sm:$0xff] }
  0x5c   :  { %870 = vmatpush.bf16.msrb.mxu2 %v1552_v8  ;;  %v1576_v8 = vor.u32 %v1778_v3, %v1573_v5 }
  0x5d   :  { %857 = vmatpush.bf16.msra.mxu3 %v1480_v14  ;;  %v1780_v14 = vld [vmem:[#allocation4] sm:$0xff] }
  0x5e   :  { %843 = vmatpush.bf16.msra.mxu1 %v1416_v60 }
  0x5f   :  { %830 = vmatpush.bf16.msra.mxu0 %v1344_v20 }
  0x60   :  { %871 = vmatpush.bf16.msrb.mxu2 %v1544_v18 }
  0x61   :  { %858 = vmatpush.bf16.msra.mxu3 %v1472_v24 }
  0x62   :  { %844 = vmatpush.bf16.msra.mxu1 %v1408_v29 }
  0x63   :  { %831 = vmatpush.bf16.msra.mxu0 %v1336_v32 }
  0x64   :  { %872 = vmatpush.bf16.msrb.mxu2 %v1536_v30 }
  0x65   :  { %859 = vmatpush.bf16.msra.mxu3 %v1464_v36  ;;  %v1794_v36 = vld [vmem:[#allocation4 + $0x70] sm:$0xff] }
  0x66   :  { %845 = vmatpush.bf16.msra.mxu1 %v1400_v42 }
  0x67   :  { %832 = vmatpush.bf16.msra.mxu0 %v1328_v46 }
  0x68   :  { %873 = vmatpush.bf16.msrb.mxu2 %v1528_v43  ;;  %v1793_v43 = vld [vmem:[#allocation4 + $0x68] sm:$0xff] }
  0x69   :  { %860 = vmatpush.bf16.msra.mxu3 %v1456_v51  ;;  %v1791_v51 = vld [vmem:[#allocation4 + $0x58] sm:$0xff] }
  0x6a   :  { %846 = vmatpush.bf16.msra.mxu1 %v1392_v57  ;;  %v1788_v57 = vld [vmem:[#allocation4 + $0x40] sm:$0xff] }
  0x6b   :  { %833 = vmatpush.bf16.msra.mxu0 %v1320_v59 }
  0x6c   :  { %874 = vmatpush.bf16.msrb.mxu2 %v1520_v58 }
  0x6d   :  { %861 = vmatpush.bf16.msra.mxu3 %v1448_v0 }
  0x6e   :  { %847 = vmatpush.bf16.msra.mxu1 %v1384_v6  ;;  %834 = vmatmul.bf16.vlgmr.msra.gmra.mxu0 %v1939_v54  ;;  %v1783_v54 = vld [vmem:[#allocation4 + $0x18] sm:$0xff] }
  0x70   :  { %862 = vmatmul.bf16.vlgmr.msra.gmra.mxu3 %v1979_v37  ;;  %875 = vmatpush.bf16.msrb.mxu2 %v1512_v7  ;;  %v1782_v37 = vld [vmem:[#allocation4 + $0x10] sm:$0xff] }
  0x71   :  { %848 = vmatmul.bf16.vlgmr.msra.gmra.mxu1 %v1949_v63  ;;  %v1996_v63 = vld [vmem:[%s2035_s2] sm:$0x3]  ;;  %1048 = vmatpush.bf16.msrb.mxu3 %v1795_v31 }
  0x72   :  { %1034 = vmatpush.bf16.msrb.mxu1 %v1787_v9  ;;  %v167_v4 = vperm.slane %v1996_v63, 0  ;;  %v168_v62 = vperm.slane %v1996_v63, 1 }
  0x73   :  { %876 = vmatmul.bf16.vlgmr.msrb.gmra.mxu2 %v1981_v44 }
  0x74   :  { %889 = vmatpush.bf16.msra.mxu2 %v1576_v8 }
  0x75   :  { %1049 = vmatpush.bf16.msrb.mxu3 %v1794_v36 }
  0x76   :  { %1035 = vmatpush.bf16.msrb.mxu1 %v1786_v10 }
  0x79   :  { %1050 = vmatpush.bf16.msrb.mxu3 %v1793_v43 }
  0x7a   :  { %1036 = vmatpush.bf16.msrb.mxu1 %v1785_v11 }
  0x7d   :  { %1051 = vmatpush.bf16.msrb.mxu3 %v1792_v47 }
  0x7e   :  { %1037 = vmatpush.bf16.msrb.mxu1 %v1784_v12 }
  0x81   :  { %1052 = vmatpush.bf16.msrb.mxu3 %v1791_v51 }
  0x82   :  { %1038 = vmatpush.bf16.msrb.mxu1 %v1783_v54 }
  0x83   :  { %1578 = vmatmul.msk.bf16.vlgmr.msra.gmra.mxu2 %vm696_vm0, %v1963_v48 }
  0x85   :  { %1053 = vmatpush.bf16.msrb.mxu3 %v1790_v52 }
  0x86   :  { %1039 = vmatpush.bf16.msrb.mxu1 %v1782_v37 }
  0x89   :  { %1054 = vmatpush.bf16.msrb.mxu3 %v1789_v55 }
  0x8a   :  { %1040 = vmatpush.bf16.msrb.mxu1 %v1781_v13 }
  0x8d   :  { %1055 = vmatpush.bf16.msrb.mxu3 %v1788_v57 }
  0x8e   :  { %1041 = vmatpush.bf16.msrb.mxu1 %v1780_v14 }
  0xab   :  { %v709_v48 = vpop.f32.mrf.mxu0 }
  0xac   :  { %v710_v16 = vadd.f32 %v709_v48, %v167_v4 }
  0xae   :  { %v723_v15 = vpop.f32.mrf.mxu1 }
  0xaf   :  { %v724_v60 = vadd.f32 %v723_v15, %v710_v16 }
  0xb2   :  { %v737_v44 = vpop.f32.mrf.mxu2 }
  0xb3   :  { %v711_v17 = vpop.f32.mrf.mxu0  ;;  %v751_v19 = vpop.f32.mrf.mxu3  ;;  %v738_v22 = vadd.f32 %v737_v44, %v724_v60 }
  0xb4   :  { %v712_v21 = vadd.f32 %v711_v17, %v167_v4 }
  0xb5   :  { %v752_v25 = vadd.f32 %v751_v19, %v738_v22  ;;  %v1803_v19 = vld [vmem:[%s2038_s5 + $0x38] sm:$0xff]  ;;  %v1800_v22 = vld [vmem:[%s2038_s5 + $0x20] sm:$0xff] }
  0xb6   :  { %v725_v20 = vpop.f32.mrf.mxu1  ;;  %1133 = vmatpush.bf16.msrb.mxu0 %v1803_v19 }
  0xb7   :  { %v726_v23 = vadd.f32 %v725_v20, %v712_v21  ;;  %v1802_v20 = vld [vmem:[%s2038_s5 + $0x30] sm:$0xff]  ;;  %v1801_v21 = vld [vmem:[%s2038_s5 + $0x28] sm:$0xff] }
  0xba   :  { %v739_v18 = vpop.f32.mrf.mxu2  ;;  %1134 = vmatpush.bf16.msrb.mxu0 %v1802_v20 }
  0xbb   :  { %v740_v28 = vadd.f32 %v739_v18, %v726_v23  ;;  %v753_v30 = vpop.f32.mrf.mxu3  ;;  %v1799_v23 = vld [vmem:[%s2038_s5 + $0x18] sm:$0xff] }
  0xbd   :  { %v754_v32 = vadd.f32 %v753_v30, %v740_v28 }
  0xbe   :  { %1135 = vmatpush.bf16.msrb.mxu0 %v1801_v21 }
  0xc2   :  { %v793_v26 = vpop.f32.mrf.mxu2  ;;  %1136 = vmatpush.bf16.msrb.mxu0 %v1800_v22 }
  0xc6   :  { %1137 = vmatpush.bf16.msrb.mxu0 %v1799_v23 }
  0xca   :  { %v795_v40 = vpop.f32.mrf.mxu2 }
  0xcb   :  { %v765_v24 = vpop.f32.mrf.mxu0 }
  0xcc   :  { %v766_v29 = vadd.f32 %v765_v24, %v752_v25  ;;  %v1798_v24 = vld [vmem:[%s2038_s5 + $0x10] sm:$0xff]  ;;  %v1797_v25 = vld [vmem:[%s2038_s5 + $0x8] sm:$0xff] }
  0xcd   :  { %1138 = vmatpush.bf16.msrb.mxu0 %v1798_v24 }
  0xce   :  { %v779_v27 = vpop.f32.mrf.mxu1 }
  0xcf   :  { %v780_v33 = vadd.f32 %v779_v27, %v766_v29  ;;  %v1815_v29 = vld [vmem:[%s2037_s4] ss:$0 sm:$0xff] }
  0xd1   :  { %v794_v39 = vadd.f32 %v793_v26, %v780_v33  ;;  %1139 = vmatpush.bf16.msrb.mxu0 %v1797_v25  ;;  %v1796_v26 = vld [vmem:[%s2038_s5] sm:$0xff] }
  0xd3   :  { %v767_v34 = vpop.f32.mrf.mxu0  ;;  %v896_v45 = vmax.f32 %v794_v39, 0.0  ;;  %v807_v53 = vpop.f32.mrf.mxu3 }
  0xd4   :  { %v768_v35 = vadd.f32 %v767_v34, %v754_v32  ;;  %v808_v1 = vadd.f32 %v807_v53, %v168_v62 }
  0xd5   :  { %1140 = vmatpush.bf16.msrb.mxu0 %v1796_v26 }
  0xd6   :  { %v781_v38 = vpop.f32.mrf.mxu1  ;;  %v821_v50 = vpop.f32.mrf.mxu2 }
  0xd7   :  { %v782_v41 = vadd.f32 %v781_v38, %v768_v35  ;;  %v822_v6 = vadd.f32 %v821_v50, %v808_v1 }
  0xd9   :  { %v796_v42 = vadd.f32 %v795_v40, %v782_v41  ;;  %v1816_v41 = vld [vmem:[%s2039_s6] ss:$0 sm:$0xff] }
  0xdb   :  { %v898_v46 = vmax.f32 %v796_v42, 0.0  ;;  %v809_v58 = vpop.f32.mrf.mxu3 }
  0xdc   :  { %v810_v3 = vadd.f32 %v809_v58, %v168_v62 }
  0xdd   :  { %v900_v49 = vpack.c.bf16 %v898_v46, %v896_v45 }
  0xde   :  { %v823_v56 = vpop.f32.mrf.mxu2 }
  0xdf   :  { %1042 = vmatmul.bf16.vlgmr.msrb.gmra.mxu1 %v900_v49  ;;  %v824_v8 = vadd.f32 %v823_v56, %v810_v3 }
  0xeb   :  { %v835_v59 = vpop.f32.mrf.mxu0 }
  0xec   :  { %v836_v9 = vadd.f32 %v835_v59, %v822_v6 }
  0xee   :  { %v849_v0 = vpop.f32.mrf.mxu1 }
  0xef   :  { %v850_v12 = vadd.f32 %v849_v0, %v836_v9 }
  0xf3   :  { %v863_v2 = vpop.f32.mrf.mxu3  ;;  %v837_v7 = vpop.f32.mrf.mxu0 }
  0xf4   :  { %v838_v10 = vadd.f32 %v837_v7, %v824_v8  ;;  %v864_v13 = vadd.f32 %v863_v2, %v850_v12 }
  0xf6   :  { %v877_v61 = vpop.f32.mrf.mxu2  ;;  %v851_v11 = vpop.f32.mrf.mxu1 }
  0xf7   :  { %v852_v48 = vadd.f32 %v851_v11, %v838_v10  ;;  %v878_v14 = vadd.f32 %v877_v61, %v864_v13 }
  0xfb   :  { %v865_v54 = vpop.f32.mrf.mxu3 }
  0xfc   :  { %v866_v44 = vadd.f32 %v865_v54, %v852_v48 }
  0xfe   :  { %v879_v5 = vpop.f32.mrf.mxu2 }
  0xff   :  { %v880_v15 = vadd.f32 %v879_v5, %v866_v44 }
 0x106   :  { %v891_v37 = vpop.f32.mrf.mxu2 }
 0x107   :  { %v892_v63 = vadd.f32 %v891_v37, %v878_v14 }
 0x109   :  { %v897_v17 = vmax.f32 %v892_v63, 0.0 }
 0x10e   :  { %v893_v4 = vpop.f32.mrf.mxu2 }
 0x10f   :  { %v894_v16 = vadd.f32 %v893_v4, %v880_v15 }
 0x111   :  { %v899_v60 = vmax.f32 %v894_v16, 0.0 }
 0x113   :  { %v901_v18 = vpack.c.bf16 %v899_v60, %v897_v17 }
 0x115   :  { %1056 = vmatmul.bf16.vlgmr.msrb.gmra.mxu3 %v901_v18 }
 0x15c   :  { %v1043_v27 = vpop.f32.mrf.mxu1 }
 0x15d   :  { %v1044_v31 = vadd.f32 %v1815_v29, %v1043_v27 }
 0x164   :  { %v1045_v30 = vpop.f32.mrf.mxu1 }
 0x165   :  { %v1046_v32 = vadd.f32 %v1815_v29, %v1045_v30 }
 0x198   :  { %v1057_v28 = vpop.f32.mrf.mxu3 }
 0x199   :  { %v1058_v33 = vadd.f32 %v1057_v28, %v1044_v31 }
 0x19b   :  { %v1062_v36 = vmax.f32 %v1058_v33, 0.0 }
 0x1a0   :  { %v1059_v34 = vpop.f32.mrf.mxu3 }
 0x1a1   :  { %v1060_v35 = vadd.f32 %v1059_v34, %v1046_v32 }
 0x1a3   :  { %v1063_v38 = vmax.f32 %v1060_v35, 0.0 }
 0x1a5   :  { %v1064_v39 = vpack.c.bf16 %v1063_v38, %v1062_v36 }
 0x1a7   :  { %1141 = vmatmul.bf16.vlgmr.msrb.gmra.mxu0 %v1064_v39 }
 0x224   :  { %v1142_v40 = vpop.f32.mrf.mxu0 }
 0x225   :  { %v1143_v43 = vadd.f32 %v1816_v41, %v1142_v40 }
 0x22c   :  { %v1144_v42 = vpop.f32.mrf.mxu0 }
 0x22d   :  { %v1145_v45 = vadd.f32 %v1816_v41, %v1144_v42 }
 0x22f   :  { %v1807_v46 = vpack.c.bf16 %v1145_v45, %v1143_v43 }
 0x231   :  { %1808 = vst [vmem:[%s2040_s7] sm:$0xff] %v1807_v46  }
 0x232   :  { %1155 = vsyncpa [#allocation3], 1 }
 0x233   :  { %1156 = vsyncpa [#allocation5], 1 }

</bundles_post_ra>
